<compile_context>
chip_gen: v6e
topology: v6e:2x2x1
jax: 0.10.0
libtpu: 0.0.40
codegen_flags: <defaults>
</compile_context>

<pallas_src>
import functools

import jax
import jax.numpy as jnp
from jax.experimental import pallas as pl
from jax.experimental.pallas import tpu as pltpu


def _round_up(x, m):
    return ((x + m - 1) // m) * m


def _graphconv_kernel(adj_ref, ego0_ref, *rest, n_hops, tm, tk, np_, perturbed):
    """Grid = (hop, row_tile, k_tile); k is the matmul reduction axis (last)."""
    if perturbed:
        noise_ref, out_ref, ego_sc, acc_sc, mean_sc = rest
    else:
        out_ref, ego_sc, acc_sc, mean_sc = rest

    h = pl.program_id(0)
    i = pl.program_id(1)
    k = pl.program_id(2)
    nk = pl.num_programs(2)

    # ego ping-pong: read hop-(h) input from half `src`, write hop-(h) output to `dst`.
    src = h % 2
    dst = 1 - src

    @pl.when((h == 0) & (i == 0) & (k == 0))
    def _init():
        ego_sc[pl.ds(0, np_), :] = ego0_ref[...]
        mean_sc[...] = jnp.zeros_like(mean_sc)

    @pl.when(k == 0)
    def _zero_acc():
        acc_sc[...] = jnp.zeros_like(acc_sc)

    # Hot path: (TM, TK) @ (TK, Dp), bf16 inputs, f32 MXU accumulation.
    rhs_start = pl.multiple_of(src * np_ + k * tk, 128)
    acc_sc[...] += jnp.dot(adj_ref[...], ego_sc[pl.ds(rhs_start, tk), :],
                           preferred_element_type=jnp.float32)

    @pl.when(k == nk - 1)
    def _finish_row_tile():
        new = acc_sc[...]
        if perturbed:
            # SimGCL: ego += sign(ego) * (eps * l2_normalize(U[0,1) noise, dim=-1))
            # noise_ref holds the pre-normalized, pre-scaled noise for (hop h, row tile i).
            new = new + jnp.sign(new) * noise_ref[0]

        row_start = pl.multiple_of(i * tm, 128)
        # carry the new ego (bf16) for the next hop
        w_start = pl.multiple_of(dst * np_ + i * tm, 128)
        ego_sc[pl.ds(w_start, tm), :] = new.astype(ego_sc.dtype)

        # running sum over hops -> mean at the end
        m_new = mean_sc[pl.ds(row_start, tm), :] + new
        mean_sc[pl.ds(row_start, tm), :] = m_new
        out_ref[...] = m_new * jnp.float32(1.0 / n_hops)


def graph_conv_forward(user_embed, item_embed, interact_mat, *,
                       n_hops, eps, perturbed=False, key=None, tile=512):
    """JAX/Pallas equivalent of GraphConv.forward (mess/edge dropout unused upstream)."""
    n_users = user_embed.shape[0]
    ego = jnp.concatenate([user_embed, item_embed], axis=0).astype(jnp.float32)
    N, D = ego.shape
    assert interact_mat.shape == (N, N)

    # Lane-dense hidden dim; node dim padded to the tile size (zero padding is inert).
    Dp = _round_up(D, 128)
    Nb = _round_up(N, 128)
    if Nb <= tile:
        TM = TK = Nb
        Np = Nb
    else:
        TM = TK = tile
        Np = _round_up(N, tile)

    adj_bf16 = jnp.pad(interact_mat.astype(jnp.bfloat16), ((0, Np - N), (0, Np - N)))
    ego_bf16 = jnp.pad(ego.astype(jnp.bfloat16), ((0, Np - N), (0, Dp - D)))

    inputs = [adj_bf16, ego_bf16]
    in_specs = [
        # adjacency: streamed (TM, TK) tiles, default double-buffering (index changes every step)
        pl.BlockSpec((TM, TK), lambda h, i, k: (i, k)),
        # initial ego: constant index map -> single buffer is enough
        pl.BlockSpec((Np, Dp), lambda h, i, k: (0, 0), pipeline_mode=pl.Buffered(1)),
    ]

    if perturbed:
        if key is None:
            key = jax.random.PRNGKey(0)
        # torch.rand_like -> U[0,1); F.normalize(dim=-1); scaled by eps (all outside the kernel)
        noise = jax.random.uniform(key, (n_hops, N, D), dtype=jnp.float32)
        norm = jnp.sqrt(jnp.sum(noise * noise, axis=-1, keepdims=True))
        noise = noise / jnp.maximum(norm, jnp.float32(1e-12)) * jnp.float32(eps)
        noise = jnp.pad(noise, ((0, 0), (0, Np - N), (0, Dp - D)))
        inputs.append(noise)
        in_specs.append(pl.BlockSpec((1, TM, Dp), lambda h, i, k: (h, i, 0)))

    kernel = functools.partial(_graphconv_kernel, n_hops=n_hops, tm=TM, tk=TK,
                               np_=Np, perturbed=perturbed)

    out = pl.pallas_call(
        kernel,
        out_shape=jax.ShapeDtypeStruct((Np, Dp), jnp.float32),
        grid_spec=pltpu.PrefetchScalarGridSpec(
            num_scalar_prefetch=0,
            grid=(n_hops, Np // TM, Np // TK),
            in_specs=in_specs,
            out_specs=pl.BlockSpec((TM, Dp), lambda h, i, k: (i, 0)),
            scratch_shapes=[
                pltpu.VMEM((2 * Np, Dp), jnp.bfloat16),   # ego ping-pong (carried across hops)
                pltpu.VMEM((TM, Dp), jnp.float32),        # per-row-tile matmul accumulator
                pltpu.VMEM((Np, Dp), jnp.float32),        # running sum over hops
            ],
        ),
        compiler_params=pltpu.CompilerParams(
            dimension_semantics=("arbitrary", "arbitrary", "arbitrary"),
            vmem_limit_bytes=56 * 1024 * 1024,            # safe raise on v5e/v6e/v7x
        ),
    )(*inputs)

    out = out[:N, :D]
    return out[:n_users], out[n_users:]


def _reference_forward(user_embed, item_embed, interact_mat, *, n_hops):
    """Pure-JAX f32 reference (perturbed=False path) for correctness checking."""
    ego = jnp.concatenate([user_embed, item_embed], axis=0).astype(jnp.float32)
    outs = []
    for _ in range(n_hops):
        ego = interact_mat.astype(jnp.float32) @ ego
        outs.append(ego)
    mean = jnp.mean(jnp.stack(outs, axis=1), axis=1)
    n_users = user_embed.shape[0]
    return mean[:n_users], mean[n_users:]


def _build_interact_mat(key, n_users, n_items):
    """Dense symmetric-normalized bipartite adjacency (stand-in for the sparse interact_mat)."""
    R = jax.random.bernoulli(key, 0.3, (n_users, n_items)).astype(jnp.float32)
    top = jnp.concatenate([jnp.zeros((n_users, n_users), jnp.float32), R], axis=1)
    bot = jnp.concatenate([R.T, jnp.zeros((n_items, n_items), jnp.float32)], axis=1)
    A = jnp.concatenate([top, bot], axis=0)
    deg = jnp.sum(A, axis=1)
    d_inv_sqrt = jnp.where(deg > 0, 1.0 / jnp.sqrt(jnp.maximum(deg, 1e-12)), 0.0)
    return d_inv_sqrt[:, None] * A * d_inv_sqrt[None, :]


if __name__ == "__main__":
    n_users, n_items, hidden, n_hops, eps = 12, 20, 32, 3, 0.1

    key = jax.random.PRNGKey(0)
    k_mat, k_user, k_item, k_noise = jax.random.split(key, 4)

    interact_mat = _build_interact_mat(k_mat, n_users, n_items)
    user_embed = jax.random.normal(k_user, (n_users, hidden), dtype=jnp.float32)
    item_embed = jax.random.normal(k_item, (n_items, hidden), dtype=jnp.float32)

    # Deterministic path (perturbed=False): check against pure-JAX f32 reference.
    # (Kernel uses bf16 adjacency/ego with f32 accumulation -> modest tolerance.)
    u_out, i_out = graph_conv_forward(user_embed, item_embed, interact_mat,
                                      n_hops=n_hops, eps=eps, perturbed=False)
    jax.block_until_ready((u_out, i_out))
    u_ref, i_ref = _reference_forward(user_embed, item_embed, interact_mat, n_hops=n_hops)
    assert u_out.shape == (n_users, hidden) and i_out.shape == (n_items, hidden)
    assert jnp.allclose(u_out, u_ref, atol=5e-2, rtol=5e-2), \
        float(jnp.max(jnp.abs(u_out - u_ref)))
    assert jnp.allclose(i_out, i_ref, atol=5e-2, rtol=5e-2), \
        float(jnp.max(jnp.abs(i_out - i_ref)))

    # Perturbed path (SimGCL noise). Randomness comes from jax.random, so it is
    # distributionally equivalent but not bitwise equal to torch.rand.
    u_p, i_p = graph_conv_forward(user_embed, item_embed, interact_mat,
                                  n_hops=n_hops, eps=eps, perturbed=True, key=k_noise)
    jax.block_until_ready((u_p, i_p))
    assert u_p.shape == (n_users, hidden) and i_p.shape == (n_items, hidden)
    assert bool(jnp.all(jnp.isfinite(u_p))) and bool(jnp.all(jnp.isfinite(i_p)))
    assert not bool(jnp.allclose(u_p, u_out, atol=1e-6))   # perturbation actually changed things

    print("KERNEL_OK")
</pallas_src>

<mosaic_0001>
module attributes {stable_mosaic.version = 11 : i64} {
  func.func @_graphconv_kernel(%arg0: i32, %arg1: i32, %arg2: i32, %arg3: memref<128x128xbf16, #tpu.memory_space<vmem>>, %arg4: memref<128x128xbf16, #tpu.memory_space<vmem>>, %arg5: memref<128x128xf32, #tpu.memory_space<vmem>>, %arg6: memref<256x128xbf16, #tpu.memory_space<vmem>>, %arg7: memref<128x128xf32, #tpu.memory_space<vmem>>, %arg8: memref<128x128xf32, #tpu.memory_space<vmem>>) attributes {dimension_semantics = [#tpu.dimension_semantics<arbitrary>, #tpu.dimension_semantics<arbitrary>, #tpu.dimension_semantics<arbitrary>], iteration_bounds = array<i64: 3, 1, 1>, scalar_prefetch = 0 : i64, scratch_operands = 3 : i64, tpu.core_type = #tpu.core_type<tc>, window_params = [{transform_indices = @transform_0, window_bounds = array<i64: 128, 128>}, {pipeline_mode = #tpu.pipeline_mode<synchronous>, transform_indices = @transform_1, window_bounds = array<i64: 128, 128>}, {transform_indices = @transform_2, window_bounds = array<i64: 128, 128>}]} {
    %c2_i32 = arith.constant 2 : i32
    %c0_i32 = arith.constant 0 : i32
    %0 = arith.cmpi eq, %c2_i32, %c0_i32 : i32
    %c1_i32 = arith.constant 1 : i32
    %1 = arith.select %0, %c1_i32, %c2_i32 : i32
    %2 = arith.remsi %arg0, %1 : i32
    %c0_i32_0 = arith.constant 0 : i32
    %3 = arith.cmpi ne, %2, %c0_i32_0 : i32
    %c0_i32_1 = arith.constant 0 : i32
    %4 = arith.cmpi slt, %2, %c0_i32_1 : i32
    %c0_i32_2 = arith.constant 0 : i32
    %5 = arith.cmpi slt, %1, %c0_i32_2 : i32
    %6 = arith.xori %4, %5 : i1
    %7 = arith.andi %6, %3 : i1
    %8 = arith.addi %2, %1 : i32
    %9 = arith.select %7, %8, %2 : i32
    %c1_i32_3 = arith.constant 1 : i32
    %10 = arith.subi %c1_i32_3, %9 : i32
    %c0_i32_4 = arith.constant 0 : i32
    %11 = arith.cmpi eq, %arg0, %c0_i32_4 : i32
    %c0_i32_5 = arith.constant 0 : i32
    %12 = arith.cmpi eq, %arg1, %c0_i32_5 : i32
    %13 = arith.andi %11, %12 : i1
    %c0_i32_6 = arith.constant 0 : i32
    %14 = arith.cmpi eq, %arg2, %c0_i32_6 : i32
    %15 = arith.andi %13, %14 : i1
    %16 = arith.extui %15 : i1 to i32
    %c0_i32_7 = arith.constant 0 : i32
    %17 = arith.cmpi ne, %16, %c0_i32_7 : i32
    scf.if %17 {
      %c0_19 = arith.constant 0 : index
      %c0_20 = arith.constant 0 : index
      %35 = vector.load %arg4[%c0_19, %c0_20] : memref<128x128xbf16, #tpu.memory_space<vmem>>, vector<128x128xbf16>
      %c0_21 = arith.constant 0 : index
      %c0_22 = arith.constant 0 : index
      %36 = vector.load %arg6[%c0_21, %c0_22] : memref<256x128xbf16, #tpu.memory_space<vmem>>, vector<128x128xbf16>
      tpu.vector_store %arg6[%c0_21, %c0_22], %35 {strides = array<i32>} : memref<256x128xbf16, #tpu.memory_space<vmem>>, vector<128x128xbf16>,
      %cst_23 = arith.constant 0.000000e+00 : f32
      %37 = vector.broadcast %cst_23 : f32 to vector<128x128xf32>
      %c0_24 = arith.constant 0 : index
      %c0_25 = arith.constant 0 : index
      %38 = vector.load %arg8[%c0_24, %c0_25] : memref<128x128xf32, #tpu.memory_space<vmem>>, vector<128x128xf32>
      tpu.vector_store %arg8[%c0_24, %c0_25], %37 {strides = array<i32>} : memref<128x128xf32, #tpu.memory_space<vmem>>, vector<128x128xf32>,
    } else {
    }
    %c0_i32_8 = arith.constant 0 : i32
    %18 = arith.cmpi eq, %arg2, %c0_i32_8 : i32
    %19 = arith.extui %18 : i1 to i32
    %c0_i32_9 = arith.constant 0 : i32
    %20 = arith.cmpi ne, %19, %c0_i32_9 : i32
    scf.if %20 {
      %cst_19 = arith.constant 0.000000e+00 : f32
      %35 = vector.broadcast %cst_19 : f32 to vector<128x128xf32>
      %c0_20 = arith.constant 0 : index
      %c0_21 = arith.constant 0 : index
      %36 = vector.load %arg7[%c0_20, %c0_21] : memref<128x128xf32, #tpu.memory_space<vmem>>, vector<128x128xf32>
      tpu.vector_store %arg7[%c0_20, %c0_21], %35 {strides = array<i32>} : memref<128x128xf32, #tpu.memory_space<vmem>>, vector<128x128xf32>,
    } else {
    }
    %c128_i32 = arith.constant 128 : i32
    %21 = arith.muli %9, %c128_i32 : i32
    %c128_i32_10 = arith.constant 128 : i32
    %22 = arith.muli %arg2, %c128_i32_10 : i32
    %23 = arith.addi %21, %22 : i32
    %24 = tpu.assume_multiple %23, 128 : i32
    %c0 = arith.constant 0 : index
    %c0_11 = arith.constant 0 : index
    %25 = vector.load %arg7[%c0, %c0_11] : memref<128x128xf32, #tpu.memory_space<vmem>>, vector<128x128xf32>
    %c0_12 = arith.constant 0 : index
    %c0_13 = arith.constant 0 : index
    %26 = vector.load %arg3[%c0_12, %c0_13] : memref<128x128xbf16, #tpu.memory_space<vmem>>, vector<128x128xbf16>
    %27 = arith.index_cast %24 : i32 to index
    %c0_14 = arith.constant 0 : index
    %28 = vector.load %arg6[%27, %c0_14] : memref<256x128xbf16, #tpu.memory_space<vmem>>, vector<128x128xbf16>
    %cst = arith.constant dense<0.000000e+00> : vector<128x128xf32>
    %29 = tpu.matmul %26, %28, %cst {dimension_numbers = #tpu.dot_dimension_numbers<[1], [0], [0], [1], [0, 0, 1, 1], [], []>} : vector<128x128xbf16>, vector<128x128xbf16>, vector<128x128xf32> -> vector<128x128xf32>
    %30 = arith.addf %25, %29 : vector<128x128xf32>
    %c0_15 = arith.constant 0 : index
    %c0_16 = arith.constant 0 : index
    %31 = vector.load %arg7[%c0_15, %c0_16] : memref<128x128xf32, #tpu.memory_space<vmem>>, vector<128x128xf32>
    tpu.vector_store %arg7[%c0_15, %c0_16], %30 {strides = array<i32>} : memref<128x128xf32, #tpu.memory_space<vmem>>, vector<128x128xf32>,
    %c0_i32_17 = arith.constant 0 : i32
    %32 = arith.cmpi eq, %arg2, %c0_i32_17 : i32
    %33 = arith.extui %32 : i1 to i32
    %c0_i32_18 = arith.constant 0 : i32
    %34 = arith.cmpi ne, %33, %c0_i32_18 : i32
    scf.if %34 {
      %c0_19 = arith.constant 0 : index
      %c0_20 = arith.constant 0 : index
      %35 = vector.load %arg7[%c0_19, %c0_20] : memref<128x128xf32, #tpu.memory_space<vmem>>, vector<128x128xf32>
      %c128_i32_21 = arith.constant 128 : i32
      %36 = arith.muli %arg1, %c128_i32_21 : i32
      %37 = tpu.assume_multiple %36, 128 : i32
      %c128_i32_22 = arith.constant 128 : i32
      %38 = arith.muli %10, %c128_i32_22 : i32
      %c128_i32_23 = arith.constant 128 : i32
      %39 = arith.muli %arg1, %c128_i32_23 : i32
      %40 = arith.addi %38, %39 : i32
      %41 = tpu.assume_multiple %40, 128 : i32
      %42 = arith.truncf %35 : vector<128x128xf32> to vector<128x128xbf16>
      %43 = arith.index_cast %41 : i32 to index
      %c0_24 = arith.constant 0 : index
      %44 = vector.load %arg6[%43, %c0_24] : memref<256x128xbf16, #tpu.memory_space<vmem>>, vector<128x128xbf16>
      tpu.vector_store %arg6[%43, %c0_24], %42 {strides = array<i32>} : memref<256x128xbf16, #tpu.memory_space<vmem>>, vector<128x128xbf16>,
      %45 = arith.index_cast %37 : i32 to index
      %c0_25 = arith.constant 0 : index
      %46 = vector.load %arg8[%45, %c0_25] : memref<128x128xf32, #tpu.memory_space<vmem>>, vector<128x128xf32>
      %47 = arith.addf %46, %35 : vector<128x128xf32>
      %48 = arith.index_cast %37 : i32 to index
      %c0_26 = arith.constant 0 : index
      %49 = vector.load %arg8[%48, %c0_26] : memref<128x128xf32, #tpu.memory_space<vmem>>, vector<128x128xf32>
      tpu.vector_store %arg8[%48, %c0_26], %47 {strides = array<i32>} : memref<128x128xf32, #tpu.memory_space<vmem>>, vector<128x128xf32>,
      %cst_27 = arith.constant 0.333333343 : f32
      %50 = vector.broadcast %cst_27 : f32 to vector<128x128xf32>
      %51 = arith.mulf %47, %50 : vector<128x128xf32>
      %c0_28 = arith.constant 0 : index
      %c0_29 = arith.constant 0 : index
      %52 = vector.load %arg5[%c0_28, %c0_29] : memref<128x128xf32, #tpu.memory_space<vmem>>, vector<128x128xf32>
      tpu.vector_store %arg5[%c0_28, %c0_29], %51 {strides = array<i32>} : memref<128x128xf32, #tpu.memory_space<vmem>>, vector<128x128xf32>,
    } else {
    }
    return
  }
  func.func @transform_0(%arg0: i32, %arg1: i32, %arg2: i32) -> (i32, i32) {
    %c0_i32 = arith.constant 0 : i32
    return %arg1, %arg2 : i32, i32
  }
  func.func @transform_1(%arg0: i32, %arg1: i32, %arg2: i32) -> (i32, i32) {
    %c0_i32 = arith.constant 0 : i32
    %c0_i32_0 = arith.constant 0 : i32
    %c0_i32_1 = arith.constant 0 : i32
    return %c0_i32, %c0_i32_0 : i32, i32
  }
  func.func @transform_2(%arg0: i32, %arg1: i32, %arg2: i32) -> (i32, i32) {
    %c0_i32 = arith.constant 0 : i32
    %c0_i32_0 = arith.constant 0 : i32
    return %arg1, %c0_i32 : i32, i32
  }
}

</mosaic_0001>

<bundles_post_ra>
// kernel: tpu_custom_call.1
= control target key start
LH: loop header
LB: loop body
LE: loop exit
PB: predicated region body
PF: predicated region fallthrough
CT: control target
= control target key end

     0   :  { %7 = vsyncpa [#allocation6], 0  ;;  %s1334_s0 = inlined_call_operand.hbm [shape: bf16[128,128], index: 0, kind: input, shape index: {}]   ;;  %s1335_s1 = inlined_call_operand.hbm [shape: bf16[128,128], index: 1, kind: input, shape index: {}]   ;;  %s1336_s2 = inlined_call_operand.hbm [shape: f32[128,128], index: 2, kind: output, shape index: {}]  }
   0x1   :  { %8 = vsyncpa [#allocation9], 0 }
   0x2   :  { %9 = vsyncpa [#allocation7], 0  ;;  %s1208_s9 = smov 0   ;;  %s1210_s10 = smov 0  }
   0x3   :  { %s1212_s11 = smov 0  }
   0x4 LB: > { %s819_s12 = sadd.s32 4294967295, %s1183_s11   ;;  %s34_s13 = sadd.s32 1, %s1179_s10  ;;  %s1183_s11 = sphi %s1212_s11, %s15_s11   ;;  %s1179_s10 = sphi %s1210_s10, %s1342_s10   ;;  %s1175_s9 = sphi %s1208_s9, %s1341_s9  }
   0x5   : > { %p36_p0 = scmp.ge.s32.totalorder %s34_s13, 3  ;;  %p820_p1 = scmp.ge.s32.totalorder %s1183_s11, 1 }
   0x6   : > { %p114_p2 = scmp.lt.s32.totalorder %s1183_s11, 4  ;;  %p1235_p4 = scmp.eq.s32.totalorder %s819_s12, 0 }
   0x7   : > { %s1344_s13 = smov (%p36_p0, %s34_s13), 0  ;;  %s1185_s16 = smov [#allocation5]  }
   0x8   : > { %p1229_p3 = pnand %p820_p1, %p114_p2  ;;  %s130_s17 = sshll.u32 %s1185_s16, 4  ;;  %s131_s17 = int_to_ptr.vmem [resolvable:$true] %s130_s17 }
   0x9   : > { %s1186_s19 = smov [#allocation8]   ;;  %s1084_s21 = scalar_lea.vmem %s131_s17, 1024 }
   0xa   : > { %p1012_p5 = pneg %p1229_p3  ;;  %s143_s20 = sshll.u32 %s1186_s19, 4  ;;  %s144_s20 = int_to_ptr.vmem [resolvable:$true] %s143_s20 }
   0xb   : > { %p1085_p8 = scmp.ne.s32.totalorder %s131_s17, %s1084_s21  ;;  %p1092_p11 = scmp.lt.s32.totalorder %s131_s17, %s131_s17 }
   0xc   : > { %p1243_p6 = pnand %p1235_p4, %p1012_p5  ;;  %p1093_p12 = scmp.lt.s32.totalorder %s1084_s21, %s1084_s21 }
   0xe   : > { %p1075_p7 = pneg %p1243_p6  ;;  %p1094_p13 = por %p1093_p12, %p1092_p11 }
  0x10   : > { %p1087_p9 = pnand %p1085_p8, %p1075_p7 }
  0x12   : > { %p1088_p10 = pneg %p1087_p9 }
  0x14   : > { %p1095_p0 = pnand %p1094_p13, %p1088_p10 }
  0x16   : > { %1098 = shalt.err (!%p1095_p0)
}
  0x17   : > { %s1187_s22 = smov 64   ;;  %s1188_s23 = smov 4  }
  0x18   : > { %1015 = dma.hbm_to_vmem [thread:$0]  (!%p1243_p6), %s1334_s0, 1024, %s131_s17, [#allocation6], %s1187_s22, %s1187_s22, %s1188_s23  }
  0x19   : > { %s1110_s26 = scalar_lea.vmem %s144_s20, 1024  ;;  %p1118_p8 = scmp.lt.s32.totalorder %s144_s20, %s144_s20 }
  0x1a   : > { %p1111_p1 = scmp.ne.s32.totalorder %s144_s20, %s1110_s26  ;;  %p1119_p9 = scmp.lt.s32.totalorder %s1110_s26, %s1110_s26 }
  0x1c   : > { %p1113_p2 = pnand %p1111_p1, %p1075_p7  ;;  %p1120_p11 = por %p1119_p9, %p1118_p8 }
  0x1e   : > { %p1114_p5 = pneg %p1113_p2 }
  0x20   : > { %p1121_p10 = pnand %p1120_p11, %p1114_p5 }
  0x22   : > { %1124 = shalt.err (!%p1121_p10)
}
  0x23   : > { %1018 = dma.hbm_to_vmem [thread:$0]  (!%p1243_p6), %s1335_s1, 1024, %s144_s20, [#allocation9], %s1187_s22, %s1187_s22, %s1188_s23  }
  0x24   : > { %159 = sbr.rel (%p1229_p3) target bundleno = 319 (0x13f), region = 28 }
  0x29   : > { %1162 = dma.done.wait (%p1235_p4), [#allocation6], 1024  }
  0x2a   : > { %1164 = vsyncadd (%p1235_p4), [#allocation6], 4294966272 }
  0x2b   : > { %1166 = dma.done.wait (%p1235_p4), [#allocation9], 1024  }
  0x2c   : > { %1168 = vsyncadd (%p1235_p4), [#allocation9], 4294966272  ;;  %p178_p6 = scmp.lt.s32.totalorder %s1175_s9, 0  ;;  %s179_s29 = ssub.s32 0, %s1175_s9 }
  0x2d   : > { %s826_s30 = smin.u32 %s1175_s9, %s179_s29  ;;  %p191_p3 = scmp.eq.s32.totalorder %s1175_s9, 0 }
  0x2e   : > { %s181_s3 = sand.u32 1, %s826_s30   ;;  %v200_v0 = vld [vmem:[#allocation8] sm:$0xff] (%p191_p3)   ;;  %v202_v1 = vld [vmem:[#allocation8 + $0x8] sm:$0xff] (%p191_p3)   ;;  %v204_v2 = vld [vmem:[#allocation8 + $0x10] sm:$0xff] (%p191_p3)   ;;  %v1189_v6 = vmov (%p191_p3), 0.0  }
  0x2f   : > { %s182_s4 = ssub.s32 0, %s181_s3  ;;  %216 = vst [vmem:[#allocation2] sm:$0xff] (%p191_p3), %v200_v0   ;;  %218 = vst [vmem:[#allocation2 + $0x8] sm:$0xff] (%p191_p3), %v202_v1   ;;  %v206_v3 = vld [vmem:[#allocation8 + $0x18] sm:$0xff] (%p191_p3)   ;;  %v208_v4 = vld [vmem:[#allocation8 + $0x20] sm:$0xff] (%p191_p3)  }
  0x30   : > { %s1346_s4 = smov (!%p178_p6, %s182_s4), %s181_s3  ;;  %199 = sbr.rel (!%p191_p3) target bundleno = 59 (0x3b), region = 40  ;;  %220 = vst [vmem:[#allocation2 + $0x10] sm:$0xff] (%p191_p3), %v204_v2   ;;  %v210_v5 = vld [vmem:[#allocation8 + $0x28] sm:$0xff] (%p191_p3)   ;;  %232 = vst [vmem:[#allocation4 + $0x30] sm:$0xff] (%p191_p3), %v1189_v6  ;;  %v212_v7 = vld [vmem:[#allocation8 + $0x30] sm:$0xff] (%p191_p3)  }
  0x31   : > { %p828_p7 = scmp.lt.s32.totalorder %s1346_s4, 0  ;;  %s188_s5 = sadd.s32 2, %s1346_s4  ;;  %233 = vst [vmem:[#allocation4] sm:$0xff] (%p191_p3), %v1189_v6  ;;  %234 = vst [vmem:[#allocation4 + $0x58] sm:$0xff] (%p191_p3), %v1189_v6  ;;  %v214_v8 = vld [vmem:[#allocation8 + $0x38] sm:$0xff] (%p191_p3)  }
  0x32   : > { %235 = vst [vmem:[#allocation4 + $0x18] sm:$0xff] (%p191_p3), %v1189_v6  ;;  %236 = vst [vmem:[#allocation4 + $0x50] sm:$0xff] (%p191_p3), %v1189_v6 }
  0x33   : > { %s1348_s5 = smov (!%p828_p7, %s188_s5), %s1346_s4  ;;  %237 = vst [vmem:[#allocation4 + $0x68] sm:$0xff] (%p191_p3), %v1189_v6  ;;  %238 = vst [vmem:[#allocation4 + $0x8] sm:$0xff] (%p191_p3), %v1189_v6 }
  0x34   : > { %s190_s6 = ssub.s32 1, %s1348_s5  ;;  %239 = vst [vmem:[#allocation4 + $0x48] sm:$0xff] (%p191_p3), %v1189_v6  ;;  %240 = vst [vmem:[#allocation4 + $0x40] sm:$0xff] (%p191_p3), %v1189_v6 }
  0x35   : > { %241 = vst [vmem:[#allocation4 + $0x20] sm:$0xff] %v1189_v6  ;;  %242 = vst [vmem:[#allocation4 + $0x10] sm:$0xff] %v1189_v6 }
  0x36   : > { %243 = vst [vmem:[#allocation4 + $0x38] sm:$0xff] %v1189_v6  ;;  %244 = vst [vmem:[#allocation4 + $0x60] sm:$0xff] %v1189_v6 }
  0x37   : > { %245 = vst [vmem:[#allocation4 + $0x70] sm:$0xff] %v1189_v6  ;;  %246 = vst [vmem:[#allocation4 + $0x78] sm:$0xff] %v1189_v6 }
  0x38   : > { %247 = vst [vmem:[#allocation4 + $0x28] sm:$0xff] %v1189_v6  ;;  %222 = vst [vmem:[#allocation2 + $0x18] sm:$0xff] %v206_v3  }
  0x39   : > { %224 = vst [vmem:[#allocation2 + $0x20] sm:$0xff] %v208_v4   ;;  %226 = vst [vmem:[#allocation2 + $0x28] sm:$0xff] %v210_v5  }
  0x3a   : > { %228 = vst [vmem:[#allocation2 + $0x30] sm:$0xff] %v212_v7   ;;  %230 = vst [vmem:[#allocation2 + $0x38] sm:$0xff] %v214_v8  }
  0x3b PF: > { %s831_s7 = sshll.u32 %s1348_s5, 7  ;;  %v1065_v9 = vld [vmem:[#allocation5] sm:$0xff]   ;;  %v1067_v19 = vld [vmem:[#allocation5 + $0x8] sm:$0xff]   ;;  %v1069_v21 = vld [vmem:[#allocation5 + $0x10] sm:$0xff]   ;;  %s849_s15 = sshll.u32 %s190_s6, 7 }
  0x3c   : > { %s302_s8 = sshra.s32 %s831_s7, 3  ;;  %v1066_v10 = vld [vmem:[#allocation5 + $0x20] sm:$0xff]   ;;  %968 = vmatprep.mubr.bf16.mxu0 %v1065_v9  ;;  %v1068_v20 = vld [vmem:[#allocation5 + $0x28] sm:$0xff]   ;;  %v1070_v22 = vld [vmem:[#allocation5 + $0x30] sm:$0xff]   ;;  %s633_s16 = sshra.s32 %s849_s15, 3 }
  0x3d   : > { %s832_s9 = sshll.u32 %s302_s8, 2  ;;  %976 = vmatprep.mubr.bf16.mxu1 %v1066_v10  ;;  %v1071_v23 = vld [vmem:[#allocation5 + $0x18] sm:$0xff]   ;;  %v654_v29 = vld [vmem:[#allocation4 + $0x30] sm:$0xff]  ;;  %s1295_s17 = sshll.u32 %s633_s16, 2  ;;  %v666_v0 = vld [vmem:[#allocation4 + $0x60] sm:$0xff] }
  0x3e   : > { %s1283_s14 = scalar_lea.vmem [#allocation2], %s832_s9  ;;  %v1072_v24 = vld [vmem:[#allocation5 + $0x38] sm:$0xff]   ;;  %v655_v43 = vld [vmem:[#allocation4] sm:$0xff]  ;;  %s1298_s18 = scalar_lea.vmem [#allocation2], %s1295_s17 }
  0x3f   : > { %v656_v25 = vld [vmem:[#allocation4 + $0x58] sm:$0xff]  ;;  %v658_v63 = vld [vmem:[#allocation4 + $0x50] sm:$0xff]  ;;  %s1190_s19 = smov [#allocation10]   ;;  %p1310_p4 = scmp.eq.s32.totalorder %s819_s12, 2 }
  0x40   : > { %v657_v35 = vld [vmem:[#allocation4 + $0x18] sm:$0xff]  ;;  %v660_v53 = vld [vmem:[#allocation4 + $0x8] sm:$0xff]  ;;  %s743_s20 = sshll.u32 %s1190_s19, 4  ;;  %s744_s20 = int_to_ptr.vmem [resolvable:$true] %s743_s20 }
  0x41   : > { %v1057_v11 = vld [vmem:[%s1283_s14 + $0x38] sm:$0xff]   ;;  %v1058_v12 = vld [vmem:[%s1283_s14 + $0x30] sm:$0xff]   ;;  %v1059_v13 = vld [vmem:[%s1283_s14 + $0x28] sm:$0xff]   ;;  %s1125_s22 = scalar_lea.vmem %s744_s20, 2048  ;;  %p1132_p1 = scmp.lt.s32.totalorder %s744_s20, %s744_s20 }
  0x42   : > { %952 = vmatprep.subr.bf16.mxu0 %v1057_v11  ;;  %984 = vmatprep.subr.bf16.mxu1 %v1057_v11  ;;  %v1060_v14 = vld [vmem:[%s1283_s14 + $0x20] sm:$0xff]   ;;  %v1061_v15 = vld [vmem:[%s1283_s14 + $0x18] sm:$0xff]   ;;  %v1062_v16 = vld [vmem:[%s1283_s14 + $0x10] sm:$0xff]   ;;  %p1126_p12 = scmp.ne.s32.totalorder %s744_s20, %s1125_s22  ;;  %p1133_p2 = scmp.lt.s32.totalorder %s1125_s22, %s1125_s22 }
  0x43   : > { %953 = vmatpush3.bf16.msra.mxu0 %v1057_v11  ;;  %992 = vmatpush3.bf16.msra.mxu1 %v1057_v11  ;;  %v1063_v17 = vld [vmem:[%s1283_s14 + $0x8] sm:$0xff]   ;;  %v1064_v18 = vld [vmem:[%s1283_s14] sm:$0xff]   ;;  %v664_v26 = vld [vmem:[#allocation4 + $0x10] sm:$0xff] }
  0x44   : > { %954 = vmatprep.subr.bf16.mxu0 %v1058_v12  ;;  %985 = vmatprep.subr.bf16.mxu1 %v1058_v12  ;;  %v662_v30 = vld [vmem:[#allocation4 + $0x40] sm:$0xff]  ;;  %v665_v40 = vld [vmem:[#allocation4 + $0x38] sm:$0xff]  ;;  %v661_v7 = vld [vmem:[#allocation4 + $0x48] sm:$0xff]  ;;  %p1127_p13 = pnand %p1126_p12, %p1310_p4  ;;  %p1134_p5 = por %p1133_p2, %p1132_p1 }
  0x45   : > { %v663_v48 = vld [vmem:[#allocation4 + $0x20] sm:$0xff]  ;;  %v668_v54 = vld [vmem:[#allocation4 + $0x78] sm:$0xff] }
  0x46   : > { %p1128_p0 = pneg %p1127_p13 }
  0x47   : > { %955 = vmatpush3.bf16.msra.mxu0 %v1058_v12  ;;  %993 = vmatpush3.bf16.msra.mxu1 %v1058_v12  ;;  %v669_v12 = vld [vmem:[#allocation4 + $0x28] sm:$0xff] }
  0x48   : > { %956 = vmatprep.subr.bf16.mxu0 %v1059_v13  ;;  %986 = vmatprep.subr.bf16.mxu1 %v1059_v13  ;;  %p1135_p8 = pnand %p1134_p5, %p1128_p0 }
  0x4b   : > { %957 = vmatpush3.bf16.msra.mxu0 %v1059_v13  ;;  %994 = vmatpush3.bf16.msra.mxu1 %v1059_v13 }
  0x4c   : > { %958 = vmatprep.subr.bf16.mxu0 %v1060_v14  ;;  %987 = vmatprep.subr.bf16.mxu1 %v1060_v14 }
  0x4f   : > { %959 = vmatpush3.bf16.msra.mxu0 %v1060_v14  ;;  %995 = vmatpush3.bf16.msra.mxu1 %v1060_v14 }
  0x50   : > { %960 = vmatprep.subr.bf16.mxu0 %v1061_v15  ;;  %988 = vmatprep.subr.bf16.mxu1 %v1061_v15 }
  0x53   : > { %961 = vmatpush3.bf16.msra.mxu0 %v1061_v15  ;;  %996 = vmatpush3.bf16.msra.mxu1 %v1061_v15  ;;  %v659_v15 = vld [vmem:[#allocation4 + $0x68] sm:$0xff] }
  0x54   : > { %962 = vmatprep.subr.bf16.mxu0 %v1062_v16  ;;  %989 = vmatprep.subr.bf16.mxu1 %v1062_v16 }
  0x57   : > { %963 = vmatpush3.bf16.msra.mxu0 %v1062_v16  ;;  %997 = vmatpush3.bf16.msra.mxu1 %v1062_v16 }
  0x58   : > { %964 = vmatprep.subr.bf16.mxu0 %v1063_v17  ;;  %990 = vmatprep.subr.bf16.mxu1 %v1063_v17 }
  0x5b   : > { %965 = vmatpush3.bf16.msra.mxu0 %v1063_v17  ;;  %998 = vmatpush3.bf16.msra.mxu1 %v1063_v17 }
  0x5c   : > { %966 = vmatprep.subr.bf16.mxu0 %v1064_v18  ;;  %991 = vmatprep.subr.bf16.mxu1 %v1064_v18 }
  0x5f   : > { %967 = vmatpush3.bf16.msra.mxu0 %v1064_v18  ;;  %999 = vmatpush3.bf16.msra.mxu1 %v1064_v18 }
  0x62   : > { %969 = vmatmul.mubr.bf16.vlgmr.msra.gmra.mxu0 %v1067_v19  ;;  %977 = vmatmul.mubr.bf16.vlgmr.msra.gmra.mxu1 %v1068_v20  ;;  %v667_v20 = vld [vmem:[#allocation4 + $0x70] sm:$0xff] }
  0x63   : > { %972 = vmatprep.mubr.bf16.mxu0 %v1069_v21  ;;  %980 = vmatprep.mubr.bf16.mxu1 %v1070_v22 }
  0x6a   : > { %973 = vmatmul.mubr.bf16.gmra.mxu0 %v1071_v23  ;;  %981 = vmatmul.mubr.bf16.gmra.mxu1 %v1072_v24 }
 0x122   : > { %v970_v27 = vpop.f32.mrf.mxu0  ;;  %v978_v28 = vpop.f32.mrf.mxu1 }
 0x123   : > { %v672_v31 = vadd.f32 %v970_v27, %v656_v25  ;;  %v680_v32 = vadd.f32 %v978_v28, %v664_v26 }
 0x124   : > { %v452_v33 = vpop.f32.mrf.mxu0  ;;  %v484_v34 = vpop.f32.mrf.mxu1 }
 0x125   : > { %688 = vst [vmem:[#allocation4 + $0x58] sm:$0xff] %v672_v31  ;;  %v704_v36 = vmul.f32 0.33333334, %v672_v31  ;;  %696 = vst [vmem:[#allocation4 + $0x10] sm:$0xff] %v680_v32  ;;  %v712_v37 = vmul.f32 0.33333334, %v680_v32  ;;  %v670_v38 = vadd.f32 %v654_v29, %v452_v33  ;;  %v678_v39 = vadd.f32 %v662_v30, %v484_v34 }
 0x126   : > { %v971_v41 = vpop.f32.mrf.mxu0  ;;  %v979_v42 = vpop.f32.mrf.mxu1 }
 0x127   : > { %720 = vst [vmem:[#allocation10 + $0x10] sm:$0xff] %v704_v36  ;;  %728 = vst [vmem:[#allocation10 + $0x50] sm:$0xff] %v712_v37  ;;  %v702_v44 = vmul.f32 0.33333334, %v670_v38  ;;  %v710_v45 = vmul.f32 0.33333334, %v678_v39  ;;  %v897_v46 = vpack.c.bf16 %v971_v41, %v970_v27  ;;  %v673_v47 = vadd.f32 %v971_v41, %v657_v35 }
 0x128   : > { %686 = vst [vmem:[#allocation4 + $0x30] sm:$0xff] %v670_v38  ;;  %694 = vst [vmem:[#allocation4 + $0x40] sm:$0xff] %v678_v39  ;;  %v917_v49 = vpack.c.bf16 %v979_v42, %v978_v28  ;;  %v681_v50 = vadd.f32 %v979_v42, %v665_v40  ;;  %v455_v51 = vpop.f32.mrf.mxu0  ;;  %v487_v52 = vpop.f32.mrf.mxu1 }
 0x129   : > { %718 = vst [vmem:[#allocation10] sm:$0xff] %v702_v44  ;;  %726 = vst [vmem:[#allocation10 + $0x40] sm:$0xff] %v710_v45  ;;  %v705_v55 = vmul.f32 0.33333334, %v673_v47  ;;  %v892_v56 = vpack.c.bf16 %v455_v51, %v452_v33  ;;  %v671_v57 = vadd.f32 %v655_v43, %v455_v51  ;;  %v912_v58 = vpack.c.bf16 %v487_v52, %v484_v34 }
 0x12a   : > { %929 = vst [vmem:[%s1298_s18 + $0x8] sm:$0xff] %v897_v46   ;;  %689 = vst [vmem:[#allocation4 + $0x18] sm:$0xff] %v673_v47  ;;  %v713_v59 = vmul.f32 0.33333334, %v681_v50  ;;  %v679_v60 = vadd.f32 %v663_v48, %v487_v52  ;;  %v974_v61 = vpop.f32.mrf.mxu0  ;;  %v982_v62 = vpop.f32.mrf.mxu1 }
 0x12b   : > { %933 = vst [vmem:[%s1298_s18 + $0x28] sm:$0xff] %v917_v49   ;;  %697 = vst [vmem:[#allocation4 + $0x38] sm:$0xff] %v681_v50  ;;  %v703_v1 = vmul.f32 0.33333334, %v671_v57  ;;  %v676_v2 = vadd.f32 %v974_v61, %v660_v53  ;;  %v684_v3 = vadd.f32 %v982_v62, %v668_v54 }
 0x12c   : > { %721 = vst [vmem:[#allocation10 + $0x18] sm:$0xff] %v705_v55  ;;  %893 = vst [vmem:[%s1298_s18] sm:$0xff] %v892_v56   ;;  %v711_v4 = vmul.f32 0.33333334, %v679_v60  ;;  %v468_v5 = vpop.f32.mrf.mxu0  ;;  %v500_v6 = vpop.f32.mrf.mxu1 }
 0x12d   : > { %687 = vst [vmem:[#allocation4] sm:$0xff] %v671_v57  ;;  %932 = vst [vmem:[%s1298_s18 + $0x20] sm:$0xff] %v912_v58   ;;  %v708_v8 = vmul.f32 0.33333334, %v676_v2  ;;  %v716_v9 = vmul.f32 0.33333334, %v684_v3  ;;  %v674_v10 = vadd.f32 %v658_v63, %v468_v5  ;;  %v682_v11 = vadd.f32 %v666_v0, %v500_v6 }
 0x12e   : > { %729 = vst [vmem:[#allocation10 + $0x58] sm:$0xff] %v713_v59  ;;  %695 = vst [vmem:[#allocation4 + $0x20] sm:$0xff] %v679_v60  ;;  %v975_v13 = vpop.f32.mrf.mxu0  ;;  %v983_v14 = vpop.f32.mrf.mxu1 }
 0x12f   : > { %719 = vst [vmem:[#allocation10 + $0x8] sm:$0xff] %v703_v1  ;;  %692 = vst [vmem:[#allocation4 + $0x8] sm:$0xff] %v676_v2  ;;  %v706_v16 = vmul.f32 0.33333334, %v674_v10  ;;  %v714_v17 = vmul.f32 0.33333334, %v682_v11  ;;  %v907_v18 = vpack.c.bf16 %v975_v13, %v974_v61  ;;  %v677_v19 = vadd.f32 %v975_v13, %v661_v7 }
 0x130   : > { %700 = vst [vmem:[#allocation4 + $0x78] sm:$0xff] %v684_v3  ;;  %727 = vst [vmem:[#allocation10 + $0x48] sm:$0xff] %v711_v4  ;;  %v927_v21 = vpack.c.bf16 %v983_v14, %v982_v62  ;;  %v685_v22 = vadd.f32 %v983_v14, %v669_v12  ;;  %v471_v23 = vpop.f32.mrf.mxu0  ;;  %v503_v24 = vpop.f32.mrf.mxu1 }
 0x131   : > { %724 = vst [vmem:[#allocation10 + $0x30] sm:$0xff] %v708_v8  ;;  %732 = vst [vmem:[#allocation10 + $0x70] sm:$0xff] %v716_v9  ;;  %v709_v25 = vmul.f32 0.33333334, %v677_v19  ;;  %v902_v26 = vpack.c.bf16 %v471_v23, %v468_v5  ;;  %v675_v27 = vadd.f32 %v659_v15, %v471_v23  ;;  %v922_v28 = vpack.c.bf16 %v503_v24, %v500_v6 }
 0x132   : > { %690 = vst [vmem:[#allocation4 + $0x50] sm:$0xff] %v674_v10  ;;  %698 = vst [vmem:[#allocation4 + $0x60] sm:$0xff] %v682_v11  ;;  %v717_v29 = vmul.f32 0.33333334, %v685_v22  ;;  %v683_v30 = vadd.f32 %v667_v20, %v503_v24 }
 0x133   : > { %722 = vst [vmem:[#allocation10 + $0x20] sm:$0xff] %v706_v16  ;;  %730 = vst [vmem:[#allocation10 + $0x60] sm:$0xff] %v714_v17  ;;  %v707_v31 = vmul.f32 0.33333334, %v675_v27 }
 0x134   : > { %931 = vst [vmem:[%s1298_s18 + $0x18] sm:$0xff] %v907_v18   ;;  %693 = vst [vmem:[#allocation4 + $0x48] sm:$0xff] %v677_v19  ;;  %v715_v32 = vmul.f32 0.33333334, %v683_v30 }
 0x135   : > { %935 = vst [vmem:[%s1298_s18 + $0x38] sm:$0xff] %v927_v21   ;;  %701 = vst [vmem:[#allocation4 + $0x28] sm:$0xff] %v685_v22 }
 0x136   : > { %725 = vst [vmem:[#allocation10 + $0x38] sm:$0xff] %v709_v25  ;;  %930 = vst [vmem:[%s1298_s18 + $0x10] sm:$0xff] %v902_v26  }
 0x137   : > { %691 = vst [vmem:[#allocation4 + $0x68] sm:$0xff] %v675_v27  ;;  %934 = vst [vmem:[%s1298_s18 + $0x30] sm:$0xff] %v922_v28  }
 0x138   : > { %733 = vst [vmem:[#allocation10 + $0x78] sm:$0xff] %v717_v29  ;;  %699 = vst [vmem:[#allocation4 + $0x70] sm:$0xff] %v683_v30 }
 0x139   : > { %723 = vst [vmem:[#allocation10 + $0x28] sm:$0xff] %v707_v31  ;;  %731 = vst [vmem:[#allocation10 + $0x68] sm:$0xff] %v715_v32 }
 0x13a   : > { %1138 = shalt.err (!%p1135_p8)
}
 0x13b   : > { %s1191_s12 = smov 128   ;;  %s1192_s23 = smov 8  }
 0x13c   : > { %1009 = dma.vmem_to_hbm [thread:$0]  (%p1310_p4), %s744_s20, 2048, %s1336_s2, [#allocation7], %s1191_s12, %s1191_s12, %s1192_s23  }
 0x13d   : > { %1170 = dma.done.wait (%p1310_p4), [#allocation7], 2048  }
 0x13e   : > { %1172 = vsyncadd (%p1310_p4), [#allocation7], 4294965248 }
 0x13f PF: > { %s15_s11 = sadd.s32 1, %s1183_s11   ;;  %s1341_s9 = smov %s1179_s10 }
 0x140   : > { %p12_p9 = scmp.ge.s32.totalorder %s15_s11, 5   ;;  %s1342_s10 = smov %s1344_s13 }
 0x142   :  { %14 = sbr.rel (!%p12_p9) target bundleno = 4 (0x4), region = 78 }
 0x147   :  { %759 = vsyncpa [#allocation6], 1 }
 0x148   :  { %761 = vsyncpa [#allocation6 + $0x1], 1 }
 0x149   :  { %762 = vsyncpa [#allocation9], 1 }
 0x14a   :  { %763 = vsyncpa [#allocation7], 1 }
 0x14b   :  { %765 = vsyncpa [#allocation7 + $0x1], 1 }

</bundles_post_ra>
